<compile_context>
chip_gen: v6e
topology: v6e:2x2x1
jax: 0.10.0
libtpu: 0.0.40
codegen_flags: <defaults>
</compile_context>

<pallas_src>
import functools

import jax
import jax.numpy as jnp
from jax.experimental import pallas as pl
from jax.experimental.pallas import tpu as pltpu


def _fused_affine_kernel(scal_ref, x_ref, o_ref):
    # scal_ref: SMEM (3,) f32 = [w0, w1, b]   (fused weight column + fused bias)
    # x_ref:    VMEM (2, TILE_R, LANE)  -- plane 0 = feature 0, plane 1 = feature 1
    # o_ref:    VMEM (TILE_R, LANE)     -- dense, unmasked stores
    w0 = scal_ref[0]
    w1 = scal_ref[1]
    b = scal_ref[2]
    o_ref[...] = x_ref[0] * w0 + x_ref[1] * w1 + b


@functools.partial(jax.jit, static_argnames=("lane", "max_tile_elems"))
def circle_model_v1_forward(x, params, *, lane=512, max_tile_elems=1 << 19):
    """x: (B, 2) float32. params: dict of w1,b1,w2,b2,w3,b3 (weights stored (in,out)).
    Returns (B, 1) float32, matching layer_3(layer_2(layer_1(x)))."""
    w1, b1, w2, b2, w3, b3 = (params[k] for k in ("w1", "b1", "w2", "b2", "w3", "b3"))

    # Fold the affine chain once (tiny matmuls, plain JAX): W_fused (2,1), b_fused (1,1).
    # NOTE: valid only because the module has no nonlinearity; fp rounding order differs
    # slightly from the sequential three-Linear reference (matches to ~1e-4).
    w_fused = w1 @ w2 @ w3                       # (2, 1)
    b_fused = (b1 @ w2 + b2) @ w3 + b3           # (1, 1)
    scalars = jnp.concatenate(
        [w_fused.reshape(-1), b_fused.reshape(-1)]
    ).astype(jnp.float32)                        # (3,) = [w0, w1, b]

    B = x.shape[0]
    # --- tiling: dense (TILE_R, LANE) blocks, TILE_R mult of 8, LANE mult of 128 ---
    rows = pl.cdiv(B, lane)                                  # rows needed to cover B
    max_tile_r = max(8, (max_tile_elems // lane) // 8 * 8)   # cap per-step footprint
    tile_r = min(max_tile_r, pl.cdiv(rows, 8) * 8)           # don't over-tile tiny B
    rows_pad = pl.cdiv(rows, tile_r) * tile_r
    b_pad = rows_pad * lane
    grid = rows_pad // tile_r

    # Minimal relayout: one transpose, conditional pad, free reshape (all fused under jit).
    xt = x.astype(jnp.float32).T                             # (2, B)
    if b_pad != B:
        xt = jnp.pad(xt, ((0, 0), (0, b_pad - B)))           # zero-pad tail lanes
    x3 = xt.reshape(2, rows_pad, lane)                       # two dense planes

    out2 = pl.pallas_call(
        _fused_affine_kernel,
        out_shape=jax.ShapeDtypeStruct((rows_pad, lane), jnp.float32),
        grid=(grid,),
        in_specs=[
            # Fused scalars: whole (3,) array resident in SMEM across all grid steps.
            pl.BlockSpec(memory_space=pltpu.MemorySpace.SMEM),
            # Dense batch-tiled input: both feature planes in one (2, TILE_R, LANE) block.
            pl.BlockSpec((2, tile_r, lane), lambda i: (0, i, 0),
                         memory_space=pltpu.MemorySpace.VMEM),
        ],
        out_specs=pl.BlockSpec((tile_r, lane), lambda i: (i, 0),
                               memory_space=pltpu.MemorySpace.VMEM),
        compiler_params=pltpu.CompilerParams(
            dimension_semantics=("parallel",),   # batch tiles shard across TCs on v7x
        ),
    )(scalars, x3)

    # Padded tail lanes hold the bias value; slice them off before returning.
    return out2.reshape(-1)[:B].reshape(B, 1)


def init_params(key):
    """Deterministic init mirroring nn.Linear shapes of CircleModelV1.
    Weights stored as (in, out); biases as (1, out)."""
    k1, k2, k3, k4, k5, k6 = jax.random.split(key, 6)

    def lin(kw, kb, fan_in, fan_out):
        bound = 1.0 / jnp.sqrt(fan_in)
        w = jax.random.uniform(kw, (fan_in, fan_out), jnp.float32, -bound, bound)
        b = jax.random.uniform(kb, (1, fan_out), jnp.float32, -bound, bound)
        return w, b

    w1, b1 = lin(k1, k2, 2, 10)
    w2, b2 = lin(k3, k4, 10, 10)
    w3, b3 = lin(k5, k6, 10, 1)
    return {"w1": w1, "b1": b1, "w2": w2, "b2": b2, "w3": w3, "b3": b3}


if __name__ == "__main__":
    key = jax.random.PRNGKey(0)
    pkey, xkey = jax.random.split(key)
    params = init_params(pkey)

    # Small example batch; non-multiple of the lane width to exercise the padding path.
    B = 300
    x = jax.random.normal(xkey, (B, 2), dtype=jnp.float32)

    out = circle_model_v1_forward(x, params)
    out = jax.block_until_ready(out)

    # Reference: the original un-fused three-Linear chain in plain JAX.
    ref = ((x @ params["w1"] + params["b1"]) @ params["w2"] + params["b2"]) @ params["w3"] + params["b3"]
    assert out.shape == (B, 1)
    assert jnp.allclose(out, ref, atol=1e-4, rtol=1e-4)

    print("KERNEL_OK")
</pallas_src>

<mosaic_0001>
module attributes {stable_mosaic.version = 11 : i64} {
  func.func @_fused_affine_kernel(%arg0: i32, %arg1: memref<3xf32, #tpu.memory_space<smem>>, %arg2: memref<2x8x512xf32, #tpu.memory_space<vmem>>, %arg3: memref<8x512xf32, #tpu.memory_space<vmem>>) attributes {dimension_semantics = [#tpu.dimension_semantics<parallel>], iteration_bounds = array<i64: 1>, scalar_prefetch = 0 : i64, scratch_operands = 0 : i64, tpu.core_type = #tpu.core_type<tc>, window_params = [{transform_indices = @transform_0, window_bounds = array<i64: 3>}, {transform_indices = @transform_1, window_bounds = array<i64: 2, 8, 512>}, {transform_indices = @transform_2, window_bounds = array<i64: 8, 512>}]} {
    %c0 = arith.constant 0 : index
    %0 = memref.load %arg1[%c0] : memref<3xf32, #tpu.memory_space<smem>>
    %c1 = arith.constant 1 : index
    %1 = memref.load %arg1[%c1] : memref<3xf32, #tpu.memory_space<smem>>
    %c2 = arith.constant 2 : index
    %2 = memref.load %arg1[%c2] : memref<3xf32, #tpu.memory_space<smem>>
    %c0_0 = arith.constant 0 : index
    %c0_1 = arith.constant 0 : index
    %c0_2 = arith.constant 0 : index
    %3 = vector.load %arg2[%c0_0, %c0_1, %c0_2] : memref<2x8x512xf32, #tpu.memory_space<vmem>>, vector<1x8x512xf32>
    %4 = vector.shape_cast %3 : vector<1x8x512xf32> to vector<8x512xf32>
    %5 = vector.broadcast %0 : f32 to vector<8x512xf32>
    %6 = arith.mulf %4, %5 : vector<8x512xf32>
    %c1_3 = arith.constant 1 : index
    %c0_4 = arith.constant 0 : index
    %c0_5 = arith.constant 0 : index
    %7 = vector.load %arg2[%c1_3, %c0_4, %c0_5] : memref<2x8x512xf32, #tpu.memory_space<vmem>>, vector<1x8x512xf32>
    %8 = vector.shape_cast %7 : vector<1x8x512xf32> to vector<8x512xf32>
    %9 = vector.broadcast %1 : f32 to vector<8x512xf32>
    %10 = arith.mulf %8, %9 : vector<8x512xf32>
    %11 = arith.addf %6, %10 : vector<8x512xf32>
    %12 = vector.broadcast %2 : f32 to vector<8x512xf32>
    %13 = arith.addf %11, %12 : vector<8x512xf32>
    %c0_6 = arith.constant 0 : index
    %c0_7 = arith.constant 0 : index
    %14 = vector.load %arg3[%c0_6, %c0_7] : memref<8x512xf32, #tpu.memory_space<vmem>>, vector<8x512xf32>
    tpu.vector_store %arg3[%c0_6, %c0_7], %13 {strides = array<i32>} : memref<8x512xf32, #tpu.memory_space<vmem>>, vector<8x512xf32>,
    return
  }
  func.func @transform_0(%arg0: i32) -> i32 {
    %c0_i32 = arith.constant 0 : i32
    %c0_i32_0 = arith.constant 0 : i32
    return %c0_i32 : i32
  }
  func.func @transform_1(%arg0: i32) -> (i32, i32, i32) {
    %c0_i32 = arith.constant 0 : i32
    %c0_i32_0 = arith.constant 0 : i32
    %c0_i32_1 = arith.constant 0 : i32
    return %c0_i32, %arg0, %c0_i32_0 : i32, i32, i32
  }
  func.func @transform_2(%arg0: i32) -> (i32, i32) {
    %c0_i32 = arith.constant 0 : i32
    %c0_i32_0 = arith.constant 0 : i32
    return %arg0, %c0_i32 : i32, i32
  }
}

</mosaic_0001>

<bundles_post_ra>
// kernel: circle_model_v1_forward.1
= control target key start
LH: loop header
LB: loop body
LE: loop exit
PB: predicated region body
PF: predicated region fallthrough
CT: control target
= control target key end

     0   :  { %7 = vsyncpa [#allocation3], 0  ;;  %s140_s0 = inlined_call_operand.vmem [shape: f32[3], index: 0, kind: input, shape index: {}]   ;;  %s141_s1 = inlined_call_operand.vmem [shape: f32[2,8,512], index: 1, kind: input, shape index: {}]   ;;  %s142_s2 = inlined_call_operand.vmem [shape: f32[8,512], index: 2, kind: output, shape index: {}]  }
   0x1   :  { %s14_s11 = sshll.u32 %s140_s0, 4  ;;  %s15_s11 = int_to_ptr.vmem [resolvable:$true] %s14_s11 }
   0x2   :  { %s71_s12 = scalar_lea.vmem %s15_s11, 16  ;;  %p76_p1 = scmp.lt.s32.totalorder %s15_s11, %s15_s11 }
   0x3   :  { %p72_p0 = scmp.ne.s32.totalorder %s15_s11, %s71_s12  ;;  %p77_p2 = scmp.lt.s32.totalorder %s71_s12, %s71_s12 }
   0x5   :  { %p78_p3 = por %p77_p2, %p76_p1 }
   0x7   :  { %p79_p4 = pnand %p78_p3, %p72_p0 }
   0x9   :  { %82 = shalt.err (!%p79_p4)
}
   0xa   :  { %s85_s13 = smov [#allocation2]  }
   0xb   :  { %17 = dma.vmem_to_smem %s15_s11, 16, %s85_s13, [#allocation3]  }
   0xc   :  { %83 = dma.done.wait [#allocation3], 16  }
   0xd   :  { %84 = vsyncadd [#allocation3], 4294967280 }
   0xe   :  { %23 = sfence }
   0xf   :  { %s24_s14 = sld [smem:[#allocation2]]  ;;  %v27_v0 = vld [vmem:[%s141_s1] sm:$0xff]  ;;  %v28_v1 = vld [vmem:[%s141_s1 + $0x8] sm:$0xff]  ;;  %v29_v2 = vld [vmem:[%s141_s1 + $0x10] sm:$0xff] }
  0x10   :  { %s64_s15 = sld [smem:[#allocation2 + $0x1]]  ;;  %v66_v3 = vld [vmem:[%s141_s1 + $0x20] sm:$0xff]  ;;  %v67_v4 = vld [vmem:[%s141_s1 + $0x28] sm:$0xff]  ;;  %v68_v5 = vld [vmem:[%s141_s1 + $0x30] sm:$0xff] }
  0x11   :  { %s65_s16 = sld [smem:[#allocation2 + $0x2]]  ;;  %v30_v7 = vld [vmem:[%s141_s1 + $0x18] sm:$0xff] }
  0x12   :  { %v69_v8 = vld [vmem:[%s141_s1 + $0x38] sm:$0xff] }
  0x15   :  { %v31_v6 = vstv %s24_s14 }
  0x16   :  { %v32_v9 = vmul.f32 %v31_v6, %v27_v0  ;;  %v41_v10 = vstv %s64_s15  ;;  %v33_v11 = vmul.f32 %v31_v6, %v28_v1  ;;  %v34_v12 = vmul.f32 %v31_v6, %v29_v2 }
  0x17   :  { %v42_v13 = vmul.f32 %v66_v3, %v41_v10  ;;  %v43_v14 = vmul.f32 %v67_v4, %v41_v10  ;;  %v44_v15 = vmul.f32 %v68_v5, %v41_v10  ;;  %v50_v16 = vstv %s65_s16 }
  0x18   :  { %v35_v17 = vmul.f32 %v31_v6, %v30_v7  ;;  %v45_v18 = vmul.f32 %v69_v8, %v41_v10 }
  0x19   :  { %v46_v19 = vadd.f32 %v42_v13, %v32_v9  ;;  %v47_v20 = vadd.f32 %v43_v14, %v33_v11  ;;  %v48_v21 = vadd.f32 %v44_v15, %v34_v12 }
  0x1a   :  { %v49_v22 = vadd.f32 %v45_v18, %v35_v17 }
  0x1b   :  { %v51_v23 = vadd.f32 %v50_v16, %v46_v19  ;;  %v52_v24 = vadd.f32 %v50_v16, %v47_v20  ;;  %v53_v25 = vadd.f32 %v50_v16, %v48_v21 }
  0x1c   :  { %v54_v26 = vadd.f32 %v50_v16, %v49_v22 }
  0x1d   :  { %55 = vst [vmem:[%s142_s2] sm:$0xff] %v51_v23  ;;  %56 = vst [vmem:[%s142_s2 + $0x8] sm:$0xff] %v52_v24 }
  0x1e   :  { %57 = vst [vmem:[%s142_s2 + $0x10] sm:$0xff] %v53_v25  ;;  %58 = vst [vmem:[%s142_s2 + $0x18] sm:$0xff] %v54_v26 }
  0x1f   :  { %63 = vsyncpa [#allocation3], 1 }

</bundles_post_ra>
